<compile_context>
chip_gen: v5e
topology: v5e:2x2
jax: 0.10.0
libtpu: 0.0.40
codegen_flags: <defaults>
</compile_context>

<pallas_src>
import math
import functools

import jax
import jax.numpy as jnp
from jax.experimental import pallas as pl
from jax.experimental.pallas import tpu as pltpu


# ----------------------------------------------------------------------------
# Activations (match the PyTorch `activations` dict)
# ----------------------------------------------------------------------------
def _gelu_tanh(a):
    # torch.nn.functional.gelu(a, approximate='tanh')  ==  NewGELUActivation
    c = math.sqrt(2.0 / math.pi)
    return 0.5 * a * (1.0 + jnp.tanh(c * (a + 0.044715 * a * a * a)))


_ACTIVATIONS = {
    "gelu_pytorch_tanh": _gelu_tanh,
    "gelu_new": _gelu_tanh,
    "relu": lambda a: jnp.maximum(a, 0.0),
}


# ----------------------------------------------------------------------------
# Fused kernel: RMS-LN -> wi (+ gated wi_1) -> act -> wo (accumulated) -> +x
# ----------------------------------------------------------------------------
def _t5_layer_ff_kernel(*refs, act_fn, gated, eps):
    if gated:
        (x_ref, lnw_ref, wi0_ref, wi1_ref, wo_ref,
         o_ref, acc_ref, xn_ref) = refs
    else:
        (x_ref, lnw_ref, wi0_ref, wo_ref,
         o_ref, acc_ref, xn_ref) = refs
        wi1_ref = None

    k = pl.program_id(1)

    @pl.when(k == 0)
    def _init():
        # T5LayerNorm (RMS norm, no mean subtraction, no bias) in f32.
        x = x_ref[...].astype(jnp.float32)
        var = jnp.mean(x * x, axis=-1, keepdims=True)
        xn = x * jax.lax.rsqrt(var + eps)
        xn = xn * lnw_ref[...].astype(jnp.float32)          # (1, D) broadcasts
        xn_ref[...] = xn.astype(xn_ref.dtype)                # compute dtype (bf16 fast path)
        acc_ref[...] = jnp.zeros_like(acc_ref)

    xn = xn_ref[...]                                          # (tm, D)
    # wi0_ref is the pre-transposed (D, tf) tile -> plain dot, no .T in kernel.
    h = jnp.dot(xn, wi0_ref[...], preferred_element_type=jnp.float32)  # (tm, tf)
    h = act_fn(h)
    if gated:
        h = h * jnp.dot(xn, wi1_ref[...], preferred_element_type=jnp.float32)
    # wo_ref is the pre-transposed (tf, D) tile; accumulate over ff tiles in f32.
    acc_ref[...] += jnp.dot(h.astype(wo_ref.dtype), wo_ref[...],
                            preferred_element_type=jnp.float32)

    @pl.when(k == pl.num_programs(1) - 1)
    def _finalize():
        # Residual add (x += forwarded_states) and write the output tile.
        o_ref[...] = (x_ref[...].astype(jnp.float32)
                      + acc_ref[...]).astype(o_ref.dtype)


# ----------------------------------------------------------------------------
# Hardware query + tile planner
# ----------------------------------------------------------------------------
def _tpu_vmem_and_cores():
    """Returns (vmem_capacity_bytes, two_tensorcores_per_chip)."""
    vmem = None
    try:
        vmem = int(pltpu.get_tpu_info().vmem_capacity_bytes)
        if vmem <= 0:
            vmem = None
    except Exception:
        vmem = None
    kind = ""
    try:
        kind = str(jax.devices()[0].device_kind).lower()
    except Exception:
        pass
    if vmem is None:
        # v7x has 64 MiB per TensorCore; v5e/v6e have 128 MiB.
        vmem = (64 << 20) if "7" in kind else (128 << 20)
    two_cores = ("7" in kind) or (vmem < (96 << 20))
    return vmem, two_cores


def _plan_tiles(tokens, D, F, n_w, w_isz, x_isz, o_isz, c_isz, budget,
                two_cores, tm_max, tf_max):
    """Pick (tm, tf) so the whole working set fits `budget` bytes of VMEM."""

    def footprint(tm, tf):
        return (2 * tm * D * x_isz          # x input tile (double-buffered)
                + 2 * tm * D * o_isz        # output tile (double-buffered)
                + 2 * D * 4                 # layer-norm weight
                + 2 * n_w * D * tf * w_isz  # weight tiles (double-buffered)
                + tm * D * 4                # f32 accumulator scratch
                + tm * D * c_isz            # normalized-x scratch
                + 3 * tm * tf * 4)          # (tm, tf) matmul/act intermediates

    # --- token-tile candidates (descending; multiples of 128 when streaming) --
    if tokens <= tm_max:
        if two_cores and tokens >= 16:
            # Keep both TensorCores busy on v7x even for small batches.
            half = -(-tokens // 2)
            half = -(-half // 8) * 8
            tm_cands = [min(half, tokens), tokens]
        else:
            tm_cands = [tokens]
    else:
        base = max((tm_max // 128) * 128, 128)
        tm_cands = list(range(base, 127, -128))

    # --- ff-tile candidates: proper divisors of F, multiples of 128, desc. ----
    tf_cands = []
    t = (min(F, tf_max) // 128) * 128
    while t >= 128:
        if F % t == 0 and t != F:
            tf_cands.append(t)
        t -= 128
    if not tf_cands:
        # TODO(synk): pad F / mask a ragged ff tile for awkward ff_dim sizes.
        tf_cands = [F]

    # 1) weights-resident mode: tf = F -> weight block index constant across
    #    the grid, Pallas DMAs the weights exactly once.
    for tm in tm_cands:
        if footprint(tm, F) <= budget:
            return tm, F
    # 2) streaming mode: prioritise tm (weight-stream arithmetic intensity
    #    ~ tm flops/byte), then the largest ff tile that still fits.
    for tm in tm_cands:
        for tf in tf_cands:
            if footprint(tm, tf) <= budget:
                return tm, tf
    # 3) last resort: smallest candidates (may still exceed budget for
    #    pathological D; vmem_limit is set from capacity so compile may fail).
    return tm_cands[-1], tf_cands[-1]


# ----------------------------------------------------------------------------
# Parameter preparation (do ONCE at init, outside any jit'd forward)
# ----------------------------------------------------------------------------
def prepare_t5_ff_params(ln_weight, wi0_weight, wo_weight, wi1_weight=None,
                         compute_dtype=None):
    """Transpose + cast the PyTorch-layout weights once.

    ln_weight  : (D,)                       T5LayerNorm scale
    wi0_weight : (F, D)                     torch Linear layout (wi / wi_0)
    wo_weight  : (D, F)                     torch Linear layout
    wi1_weight : optional (F, D)            -> gated (T5DenseGatedActDense)
    compute_dtype : MXU input dtype; default bf16 when weights are f32.
    """
    D = ln_weight.shape[0]
    F = wi0_weight.shape[0]
    assert wi0_weight.shape == (F, D)
    assert wo_weight.shape == (D, F)
    if wi1_weight is not None:
        assert wi1_weight.shape == (F, D)
    if compute_dtype is None:
        compute_dtype = (jnp.bfloat16 if wi0_weight.dtype == jnp.float32
                         else wi0_weight.dtype)
    return {
        "lnw": ln_weight.reshape(1, D).astype(jnp.float32),
        "wi0_t": jnp.transpose(wi0_weight).astype(compute_dtype),   # (D, F)
        "wi1_t": (jnp.transpose(wi1_weight).astype(compute_dtype)
                  if wi1_weight is not None else None),             # (D, F)
        "wo_t": jnp.transpose(wo_weight).astype(compute_dtype),     # (F, D)
        "compute_dtype": compute_dtype,
    }


# ----------------------------------------------------------------------------
# Fused forward
# ----------------------------------------------------------------------------
def t5_layer_ff(x, params, ff_activation="gelu_pytorch_tanh", eps=1e-6,
                *, tm=None, tf=None):
    """Fused T5LayerFF forward.  `params` comes from prepare_t5_ff_params."""
    act_fn = _ACTIVATIONS[ff_activation]
    lnw = params["lnw"]
    wi0_t = params["wi0_t"]
    wi1_t = params["wi1_t"]
    wo_t = params["wo_t"]
    c_dtype = params["compute_dtype"]
    gated = wi1_t is not None

    B, S, D = x.shape
    D2, F = wi0_t.shape
    assert D2 == D and wo_t.shape == (F, D) and lnw.shape == (1, D)

    tokens = B * S
    x2 = x.reshape(tokens, D)

    n_w = 3 if gated else 2
    w_isz = jnp.dtype(c_dtype).itemsize
    c_isz = w_isz
    x_isz = x2.dtype.itemsize

    # Generation-aware VMEM budget.
    vmem_cap, two_cores = _tpu_vmem_and_cores()
    reserve = (8 << 20) if vmem_cap <= (96 << 20) else (16 << 20)
    vmem_limit = int(max(min(vmem_cap - reserve, 128 << 20), 24 << 20))
    budget = int(vmem_limit * 0.85)
    big_vmem = vmem_cap > (96 << 20)
    tm_max = 1024 if big_vmem else 640
    tf_max = 2048 if big_vmem else 1024

    if tm is None or tf is None:
        tm_a, tf_a = _plan_tiles(tokens, D, F, n_w, w_isz, x_isz, x_isz, c_isz,
                                 budget, two_cores, tm_max, tf_max)
        if tm is None:
            tm = tm_a
        if tf is None:
            tf = tf_a

    tm = int(min(tm, tokens))
    tf = int(min(tf, F))
    assert tm == tokens or tm % 8 == 0, "tm must be sublane-aligned or full"
    assert F % tf == 0, "ff tile must divide ff_dim (ragged ff tiles are unsafe)"

    grid = (pl.cdiv(tokens, tm), F // tf)

    in_specs = [
        pl.BlockSpec((tm, D), lambda i, k: (i, 0)),    # x tile (reused across k)
        pl.BlockSpec((1, D), lambda i, k: (0, 0)),     # layer-norm weight
        pl.BlockSpec((D, tf), lambda i, k: (0, k)),    # wi_0^T tile
    ]
    inputs = [x2, lnw, wi0_t]
    if gated:
        in_specs.append(pl.BlockSpec((D, tf), lambda i, k: (0, k)))   # wi_1^T
        inputs.append(wi1_t)
    in_specs.append(pl.BlockSpec((tf, D), lambda i, k: (k, 0)))       # wo^T
    inputs.append(wo_t)

    # Weights are re-streamed once per token tile (unless tf == F); count it.
    cost = pl.CostEstimate(
        flops=2 * tokens * D * F * n_w,
        transcendentals=(tokens * F) if ff_activation != "relu" else 0,
        bytes_accessed=int(grid[0] * n_w * D * F * w_isz
                           + 2 * tokens * D * x_isz + D * 4),
    )

    out2 = pl.pallas_call(
        functools.partial(_t5_layer_ff_kernel, act_fn=act_fn, gated=gated,
                          eps=float(eps)),
        out_shape=jax.ShapeDtypeStruct((tokens, D), x.dtype),
        grid_spec=pltpu.PrefetchScalarGridSpec(
            num_scalar_prefetch=0,
            grid=grid,
            in_specs=in_specs,
            out_specs=pl.BlockSpec((tm, D), lambda i, k: (i, 0)),
            scratch_shapes=[
                pltpu.VMEM((tm, D), jnp.float32),   # output accumulator
                pltpu.VMEM((tm, D), c_dtype),       # normalized activations
            ],
        ),
        compiler_params=pltpu.CompilerParams(
            dimension_semantics=("parallel", "arbitrary"),
            vmem_limit_bytes=vmem_limit,
        ),
        cost_estimate=cost,
    )(*inputs)

    return out2.reshape(B, S, D)


# ----------------------------------------------------------------------------
# Pure-JAX reference (for sanity check)
# ----------------------------------------------------------------------------
def t5_layer_ff_ref(x, ln_weight, wi0_weight, wo_weight, wi1_weight=None,
                    ff_activation="gelu_pytorch_tanh", eps=1e-6):
    act_fn = _ACTIVATIONS[ff_activation]
    xf = x.astype(jnp.float32)
    var = jnp.mean(xf * xf, axis=-1, keepdims=True)
    xn = xf * jax.lax.rsqrt(var + eps) * ln_weight.astype(jnp.float32)
    h = act_fn(jnp.einsum("bsd,fd->bsf", xn, wi0_weight))
    if wi1_weight is not None:
        h = h * jnp.einsum("bsd,fd->bsf", xn, wi1_weight)
    y = jnp.einsum("bsf,df->bsd", h, wo_weight)
    return (xf + y).astype(x.dtype)


if __name__ == "__main__":
    key = jax.random.PRNGKey(0)
    k_x, k_ln, k_wi0, k_wi1, k_wo = jax.random.split(key, 5)

    batch, seq, model_dim, ff_dim = 2, 32, 32, 256
    ff_activation = "gelu_pytorch_tanh"
    eps = 1e-6

    x = jax.random.normal(k_x, (batch, seq, model_dim), dtype=jnp.float32)
    ln_w = 1.0 + 0.1 * jax.random.normal(k_ln, (model_dim,), dtype=jnp.float32)
    # PyTorch Linear layout: (out_features, in_features), no bias.
    wi0 = jax.random.normal(k_wi0, (ff_dim, model_dim), dtype=jnp.float32) * 0.05
    wi1 = jax.random.normal(k_wi1, (ff_dim, model_dim), dtype=jnp.float32) * 0.05
    wo = jax.random.normal(k_wo, (model_dim, ff_dim), dtype=jnp.float32) * 0.05

    # 1) Non-gated (T5DenseActDense), f32 compute path, forced small tiles so
    #    the (token, ff) grid / accumulator / init-finalize path is exercised
    #    (grid = (4, 2)).  Tight tolerance vs. the f32 reference.
    p_f32 = prepare_t5_ff_params(ln_w, wi0, wo, None, compute_dtype=jnp.float32)
    out = jax.block_until_ready(
        t5_layer_ff(x, p_f32, ff_activation, eps, tm=16, tf=128))
    ref = t5_layer_ff_ref(x, ln_w, wi0, wo, None, ff_activation, eps)
    assert out.shape == (batch, seq, model_dim)
    assert jnp.allclose(out, ref, atol=2e-4, rtol=2e-4), "mismatch (non-gated f32)"

    # 2) Gated (T5DenseGatedActDense), default bf16 MXU path, forced tiles.
    p_bf16 = prepare_t5_ff_params(ln_w, wi0, wo, wi1)       # bf16 compute dtype
    out_g = jax.block_until_ready(
        t5_layer_ff(x, p_bf16, ff_activation, eps, tm=16, tf=128))
    ref_g = t5_layer_ff_ref(x, ln_w, wi0, wo, wi1, ff_activation, eps)
    assert jnp.allclose(out_g, ref_g, atol=1e-2, rtol=1e-2), "mismatch (gated bf16)"

    # 3) Gated, automatic tile planning (weights-resident mode on this config).
    out_a = jax.block_until_ready(t5_layer_ff(x, p_bf16, ff_activation, eps))
    assert jnp.allclose(out_a, ref_g, atol=1e-2, rtol=1e-2), "mismatch (auto tiles)"

    print("KERNEL_OK")
</pallas_src>

<mosaic_0001>
module attributes {stable_mosaic.version = 11 : i64} {
  func.func @_t5_layer_ff_kernel(%arg0: i32, %arg1: i32, %arg2: memref<16x32xf32, #tpu.memory_space<vmem>>, %arg3: memref<1x32xf32, #tpu.memory_space<vmem>>, %arg4: memref<32x128xf32, #tpu.memory_space<vmem>>, %arg5: memref<128x32xf32, #tpu.memory_space<vmem>>, %arg6: memref<16x32xf32, #tpu.memory_space<vmem>>, %arg7: memref<16x32xf32, #tpu.memory_space<vmem>>, %arg8: memref<16x32xf32, #tpu.memory_space<vmem>>) attributes {dimension_semantics = [#tpu.dimension_semantics<parallel>, #tpu.dimension_semantics<arbitrary>], iteration_bounds = array<i64: 4, 2>, scalar_prefetch = 0 : i64, scratch_operands = 2 : i64, tpu.core_type = #tpu.core_type<tc>, window_params = [{transform_indices = @transform_0, window_bounds = array<i64: 16, 32>}, {pipeline_mode = #tpu.pipeline_mode<synchronous>, transform_indices = @transform_1, window_bounds = array<i64: 1, 32>}, {transform_indices = @transform_2, window_bounds = array<i64: 32, 128>}, {transform_indices = @transform_3, window_bounds = array<i64: 128, 32>}, {transform_indices = @transform_4, window_bounds = array<i64: 16, 32>}]} {
    %c0_i32 = arith.constant 0 : i32
    %0 = arith.cmpi eq, %arg1, %c0_i32 : i32
    %1 = arith.extui %0 : i1 to i32
    %c0_i32_0 = arith.constant 0 : i32
    %2 = arith.cmpi ne, %1, %c0_i32_0 : i32
    scf.if %2 {
      %c0_16 = arith.constant 0 : index
      %c0_17 = arith.constant 0 : index
      %27 = vector.load %arg2[%c0_16, %c0_17] : memref<16x32xf32, #tpu.memory_space<vmem>>, vector<16x32xf32>
      %28 = arith.mulf %27, %27 : vector<16x32xf32>
      %cst_18 = arith.constant dense<0.000000e+00> : vector<16xf32>
      %29 = vector.multi_reduction <add>, %28, %cst_18 [1] : vector<16x32xf32> to vector<16xf32>
      %30 = vector.shape_cast %29 : vector<16xf32> to vector<16x1xf32>
      %cst_19 = arith.constant 3.200000e+01 : f32
      %31 = vector.broadcast %cst_19 : f32 to vector<16x1xf32>
      %32 = arith.divf %30, %31 : vector<16x1xf32>
      %cst_20 = arith.constant 9.99999997E-7 : f32
      %33 = vector.broadcast %cst_20 : f32 to vector<16x1xf32>
      %34 = arith.addf %32, %33 : vector<16x1xf32>
      %35 = math.rsqrt %34 : vector<16x1xf32>
      %36 = vector.broadcast %35 : vector<16x1xf32> to vector<16x32xf32>
      %37 = arith.mulf %27, %36 : vector<16x32xf32>
      %c0_21 = arith.constant 0 : index
      %c0_22 = arith.constant 0 : index
      %38 = vector.load %arg3[%c0_21, %c0_22] : memref<1x32xf32, #tpu.memory_space<vmem>>, vector<1x32xf32>
      %39 = vector.broadcast %38 : vector<1x32xf32> to vector<16x32xf32>
      %40 = arith.mulf %37, %39 : vector<16x32xf32>
      %c0_23 = arith.constant 0 : index
      %c0_24 = arith.constant 0 : index
      %41 = vector.load %arg8[%c0_23, %c0_24] : memref<16x32xf32, #tpu.memory_space<vmem>>, vector<16x32xf32>
      tpu.vector_store %arg8[%c0_23, %c0_24], %40 {strides = array<i32>} : memref<16x32xf32, #tpu.memory_space<vmem>>, vector<16x32xf32>,
      %cst_25 = arith.constant 0.000000e+00 : f32
      %42 = vector.broadcast %cst_25 : f32 to vector<16x32xf32>
      %c0_26 = arith.constant 0 : index
      %c0_27 = arith.constant 0 : index
      %43 = vector.load %arg7[%c0_26, %c0_27] : memref<16x32xf32, #tpu.memory_space<vmem>>, vector<16x32xf32>
      tpu.vector_store %arg7[%c0_26, %c0_27], %42 {strides = array<i32>} : memref<16x32xf32, #tpu.memory_space<vmem>>, vector<16x32xf32>,
    } else {
    }
    %c0 = arith.constant 0 : index
    %c0_1 = arith.constant 0 : index
    %3 = vector.load %arg8[%c0, %c0_1] : memref<16x32xf32, #tpu.memory_space<vmem>>, vector<16x32xf32>
    %c0_2 = arith.constant 0 : index
    %c0_3 = arith.constant 0 : index
    %4 = vector.load %arg4[%c0_2, %c0_3] : memref<32x128xf32, #tpu.memory_space<vmem>>, vector<32x128xf32>
    %cst = arith.constant dense<0.000000e+00> : vector<16x128xf32>
    %5 = tpu.matmul %3, %4, %cst {dimension_numbers = #tpu.dot_dimension_numbers<[1], [0], [0], [1], [0, 0, 1, 1], [], []>} : vector<16x32xf32>, vector<32x128xf32>, vector<16x128xf32> -> vector<16x128xf32>
    %cst_4 = arith.constant 5.000000e-01 : f32
    %6 = vector.broadcast %cst_4 : f32 to vector<16x128xf32>
    %7 = arith.mulf %6, %5 : vector<16x128xf32>
    %cst_5 = arith.constant 4.471500e-02 : f32
    %8 = vector.broadcast %cst_5 : f32 to vector<16x128xf32>
    %9 = arith.mulf %8, %5 : vector<16x128xf32>
    %10 = arith.mulf %9, %5 : vector<16x128xf32>
    %11 = arith.mulf %10, %5 : vector<16x128xf32>
    %12 = arith.addf %5, %11 : vector<16x128xf32>
    %cst_6 = arith.constant 0.797884583 : f32
    %13 = vector.broadcast %cst_6 : f32 to vector<16x128xf32>
    %14 = arith.mulf %13, %12 : vector<16x128xf32>
    %15 = math.tanh %14 : vector<16x128xf32>
    %cst_7 = arith.constant 1.000000e+00 : f32
    %16 = vector.broadcast %cst_7 : f32 to vector<16x128xf32>
    %17 = arith.addf %16, %15 : vector<16x128xf32>
    %18 = arith.mulf %7, %17 : vector<16x128xf32>
    %c0_8 = arith.constant 0 : index
    %c0_9 = arith.constant 0 : index
    %19 = vector.load %arg7[%c0_8, %c0_9] : memref<16x32xf32, #tpu.memory_space<vmem>>, vector<16x32xf32>
    %c0_10 = arith.constant 0 : index
    %c0_11 = arith.constant 0 : index
    %20 = vector.load %arg5[%c0_10, %c0_11] : memref<128x32xf32, #tpu.memory_space<vmem>>, vector<128x32xf32>
    %cst_12 = arith.constant dense<0.000000e+00> : vector<16x32xf32>
    %21 = tpu.matmul %18, %20, %cst_12 {dimension_numbers = #tpu.dot_dimension_numbers<[1], [0], [0], [1], [0, 0, 1, 1], [], []>} : vector<16x128xf32>, vector<128x32xf32>, vector<16x32xf32> -> vector<16x32xf32>
    %22 = arith.addf %19, %21 : vector<16x32xf32>
    %c0_13 = arith.constant 0 : index
    %c0_14 = arith.constant 0 : index
    %23 = vector.load %arg7[%c0_13, %c0_14] : memref<16x32xf32, #tpu.memory_space<vmem>>, vector<16x32xf32>
    tpu.vector_store %arg7[%c0_13, %c0_14], %22 {strides = array<i32>} : memref<16x32xf32, #tpu.memory_space<vmem>>, vector<16x32xf32>,
    %c1_i32 = arith.constant 1 : i32
    %24 = arith.cmpi eq, %arg1, %c1_i32 : i32
    %25 = arith.extui %24 : i1 to i32
    %c0_i32_15 = arith.constant 0 : i32
    %26 = arith.cmpi ne, %25, %c0_i32_15 : i32
    scf.if %26 {
      %c0_16 = arith.constant 0 : index
      %c0_17 = arith.constant 0 : index
      %27 = vector.load %arg2[%c0_16, %c0_17] : memref<16x32xf32, #tpu.memory_space<vmem>>, vector<16x32xf32>
      %c0_18 = arith.constant 0 : index
      %c0_19 = arith.constant 0 : index
      %28 = vector.load %arg7[%c0_18, %c0_19] : memref<16x32xf32, #tpu.memory_space<vmem>>, vector<16x32xf32>
      %29 = arith.addf %27, %28 : vector<16x32xf32>
      %c0_20 = arith.constant 0 : index
      %c0_21 = arith.constant 0 : index
      %30 = vector.load %arg6[%c0_20, %c0_21] : memref<16x32xf32, #tpu.memory_space<vmem>>, vector<16x32xf32>
      tpu.vector_store %arg6[%c0_20, %c0_21], %29 {strides = array<i32>} : memref<16x32xf32, #tpu.memory_space<vmem>>, vector<16x32xf32>,
    } else {
    }
    return
  }
  func.func @transform_0(%arg0: i32, %arg1: i32) -> (i32, i32) {
    %c0_i32 = arith.constant 0 : i32
    %c0_i32_0 = arith.constant 0 : i32
    return %arg0, %c0_i32 : i32, i32
  }
  func.func @transform_1(%arg0: i32, %arg1: i32) -> (i32, i32) {
    %c0_i32 = arith.constant 0 : i32
    %c0_i32_0 = arith.constant 0 : i32
    %c0_i32_1 = arith.constant 0 : i32
    return %c0_i32, %c0_i32_0 : i32, i32
  }
  func.func @transform_2(%arg0: i32, %arg1: i32) -> (i32, i32) {
    %c0_i32 = arith.constant 0 : i32
    %c0_i32_0 = arith.constant 0 : i32
    return %c0_i32, %arg1 : i32, i32
  }
  func.func @transform_3(%arg0: i32, %arg1: i32) -> (i32, i32) {
    %c0_i32 = arith.constant 0 : i32
    %c0_i32_0 = arith.constant 0 : i32
    return %arg1, %c0_i32 : i32, i32
  }
  func.func @transform_4(%arg0: i32, %arg1: i32) -> (i32, i32) {
    %c0_i32 = arith.constant 0 : i32
    %c0_i32_0 = arith.constant 0 : i32
    return %arg0, %c0_i32 : i32, i32
  }
}

</mosaic_0001>

<bundles_post_ra>
// kernel: tpu_custom_call.1
= control target key start
LH: loop header
LB: loop body
LE: loop exit
PB: predicated region body
PF: predicated region fallthrough
CT: control target
= control target key end

     0   :  { %s757_s15 = smov 0   ;;  %s759_s16 = smov 0   ;;  %s900_s0 = inlined_call_operand.vmem [shape: f32[64,32], index: 0, kind: input, shape index: {}]   ;;  %s901_s1 = inlined_call_operand.vmem [shape: f32[1,32], index: 1, kind: input, shape index: {}]   ;;  %s902_s2 = inlined_call_operand.vmem [shape: f32[32,256], index: 2, kind: input, shape index: {}]   ;;  %s903_s3 = inlined_call_operand.vmem [shape: f32[256,32], index: 3, kind: input, shape index: {}]   ;;  %s904_s4 = inlined_call_operand.vmem [shape: f32[64,32], index: 4, kind: output, shape index: {}]  }
   0x1   :  { %s761_s17 = smov 0   ;;  %s763_s18 = smov 0  }
   0x2   :  { %s765_s19 = smov 0   ;;  %s767_s20 = smov 0  }
   0x3   :  { %s769_s21 = smov 0  }
   0x4 LB: > { %s23_s22 = sadd.s32 1, %s720_s19  ;;  %s26_s23 = sadd.s32 1, %s724_s20  ;;  %s728_s21 = sphi %s769_s21, %s14_s21   ;;  %s724_s20 = sphi %s767_s20, %s910_s20   ;;  %s720_s19 = sphi %s765_s19, %s909_s19   ;;  %s716_s18 = sphi %s763_s18, %s908_s18   ;;  %s712_s17 = sphi %s761_s17, %s907_s17   ;;  %s708_s16 = sphi %s759_s16, %s906_s16   ;;  %s704_s15 = sphi %s757_s15, %s905_s15  }
   0x5   : > { %p24_p0 = scmp.ge.s32.totalorder %s23_s22, 2  ;;  %s80_s24 = sadd.s32 1, %s708_s16 }
   0x6   : > { %p87_p1 = scmp.ne.s32.totalorder %s708_s16, %s704_s15  ;;  %p88_p2 = scmp.eq.s32.totalorder %s728_s21, 0 }
   0x7   : > { %s912_s22 = smov (%p24_p0, %s23_s22), 0  ;;  %s914_s23 = smov (!%p24_p0, %s26_s23), %s724_s20 }
   0x8   : > { %s77_s25 = ssub.s32 %s720_s19, %s912_s22  ;;  %p89_p3 = por %p88_p2, %p87_p1 }
   0x9   : > { %p28_p4 = scmp.ge.s32.totalorder %s914_s23, 4  ;;  %p78_p5 = scmp.eq.s32.totalorder %s77_s25, 0 }
   0xa   : > { %p572_p6 = scmp.ge.s32.totalorder %s728_s21, 8 }
   0xb   : > { %s916_s23 = smov (%p28_p4, %s914_s23), 0 }
   0xc   : > { %s806_s26 = scalar_select %p78_p5, %s708_s16, %s80_s24  }
   0xd   : > { %168 = sbr.rel (%p572_p6) target bundleno = 26 (0x1a), region = 20 }
  0x12   : > { %180 = sbr.rel (!%p89_p3) target bundleno = 26 (0x1a), region = 28  ;;  %s182_s27 = sand.u32 (%p89_p3), 1, %s708_s16  }
  0x13   : > { %s574_s28 = sshll.u32 (%p89_p3), %s720_s19, 3  ;;  %s573_s29 = sshll.u32 (%p89_p3), %s182_s27, 5 }
  0x14   : > { %s186_s6 = scalar_lea.vmem (%p89_p3), %s902_s2, %s574_s28  ;;  %s184_s7 = scalar_lea.vmem (%p89_p3), [#allocation4], %s573_s29 }
  0x15   : > { %v221_v0 = vld [vmem:[%s186_s6] sm:$0xff] (%p89_p3)  ;;  %v223_v1 = vld [vmem:[%s186_s6 + $0x10] sm:$0xff] (%p89_p3) }
  0x16   : > { %v225_v2 = vld [vmem:[%s186_s6 + $0x20] sm:$0xff] (%p89_p3)  ;;  %222 = vst [vmem:[%s184_s7] sm:$0xff] (%p89_p3), %v221_v0  ;;  %v227_v3 = vld [vmem:[%s186_s6 + $0x30] sm:$0xff] (%p89_p3) }
  0x17   : > { %224 = vst [vmem:[%s184_s7 + $0x8] sm:$0xff] %v223_v1 }
  0x18   : > { %226 = vst [vmem:[%s184_s7 + $0x10] sm:$0xff] %v225_v2 }
  0x19   : > { %228 = vst [vmem:[%s184_s7 + $0x18] sm:$0xff] %v227_v3 }
  0x1a PF: > { %p575_p7 = scmp.ge.s32.totalorder %s728_s21, 1  ;;  %p242_p8 = scmp.lt.s32.totalorder %s728_s21, 9 }
  0x1c   : > { %p243_p9 = pnand %p575_p7, %p242_p8 }
  0x1d   : > { %s249_s8 = sand.u32 (!%p243_p9), 1, %s704_s15   ;;  %s577_s9 = sshll.u32 (!%p243_p9), %s716_s18, 1 }
  0x1e   : > { %246 = sbr.rel (%p243_p9) target bundleno = 506 (0x1fa), region = 70  ;;  %s576_s10 = sshll.u32 (!%p243_p9), %s249_s8, 5 }
  0x1f   : > { %p285_p10 = scmp.lt.s32.totalorder (!%p243_p9), %s577_s9, 7  ;;  %s579_s11 = sshll.u32 (!%p243_p9), %s712_s17, 4 }
  0x20   : > { %p291_p11 = scmp.lt.s32.totalorder (!%p243_p9), %s579_s11, 31  ;;  %s834_s5 = scalar_lea.vmem (!%p243_p9), [#allocation4], %s576_s10 }
  0x21   : > { %p583_p12 = scmp.ne.s32.totalorder (!%p243_p9), %s712_s17, 0 }
  0x23   : > { %s918_s9 = smov (!%p285_p10, %s577_s9), 7  ;;  %s920_s11 = smov (!%p291_p11, %s579_s11), 31 }
  0x24   : > { %s578_s12 = sshll.u32 %s918_s9, 3  ;;  %s580_s29 = sshll.u32 %s920_s11, 3 }
  0x25   : > { %s822_s24 = scalar_lea.vmem %s900_s0, %s578_s12  ;;  %s827_s28 = scalar_lea.vmem %s904_s4, %s578_s12 }
  0x26   : > { %s832_s30 = scalar_lea.vmem %s903_s3, %s580_s29  ;;  %305 = sbr.rel (%p583_p12) target bundleno = 198 (0xc6), region = 78 }
  0x2b   : > { %v306_v4 = vld [vmem:[%s822_s24] sm:$0xff]  ;;  %vm310_vm0 = vcmask 261120   ;;  %v730_v6 = vmov 0.0   ;;  %v307_v7 = vld [vmem:[%s822_s24 + $0x8] sm:$0xff]  ;;  %v731_v11 = vmov 32.0  }
  0x2c   : > { %v308_v5 = vmul.f32 %v306_v4, %v306_v4  ;;  %358 = vst.msk [vmem:[#allocation2] sm:$0xff] %vm310_vm0, %v730_v6  ;;  %v309_v9 = vmul.f32 %v307_v7, %v307_v7  ;;  %664 = vrcp.f32 %v731_v11  ;;  %v663_v32 = vld [vmem:[%s901_s1] ss:$0 sm:$0xff] }
  0x2d   : > { %359 = vst.msk [vmem:[#allocation2 + $0x8] sm:$0xff] %vm310_vm0, %v730_v6 }
  0x2e   : > { %v311_v8 = vsel %vm310_vm0, %v308_v5, 0.0  ;;  %v314_v10 = vsel %vm310_vm0, %v309_v9, 0.0 }
  0x2f   : > { %312 = vadd.xlane.f32.xlu0 %v311_v8 }
  0x32   : > { %v665_v12 = vpop.eup %664 }
  0x33   : > { %v318_v13 = vmul.f32 32.0, %v665_v12  ;;  %vm322_vm1 = vweird.f32 %v665_v12 }
  0x35   : > { %v319_v14 = vsub.f32 1.0, %v318_v13 }
  0x37   : > { %315 = vadd.xlane.f32.xlu0 %v314_v10  ;;  %v320_v15 = vmul.f32 %v665_v12, %v319_v14 }
  0x39   : > { %v321_v16 = vadd.f32 %v665_v12, %v320_v15 }
  0x3b   : > { %v323_v17 = vsel %vm322_vm1, %v665_v12, %v321_v16 }
  0xa2   : > { %v313_v18 = vpop.xlane.xlu0 %312 }
  0xa3   : > { %v324_v19 = vmul.f32 %v323_v17, %v313_v18 }
  0xa5   : > { %v326_v20 = vadd.f32 1e-06, %v324_v19 }
  0xa7   : > { %666 = vrsqrt.f32 %v326_v20  ;;  %vm334_vm3 = vweird.f32 %v326_v20 }
  0xaa   : > { %v316_v21 = vpop.xlane.xlu0 %315 }
  0xab   : > { %v325_v22 = vmul.f32 %v323_v17, %v316_v21 }
  0xad   : > { %v667_v23 = vpop.eup %666  ;;  %v327_v24 = vadd.f32 1e-06, %v325_v22 }
  0xae   : > { %v329_v25 = vmul.f32 %v667_v23, %v326_v20  ;;  %vm335_vm2 = vweird.f32 %v667_v23 }
  0xaf   : > { %668 = vrsqrt.f32 %v327_v24  ;;  %vm336_vm4 = vmor %vm334_vm3, %vm335_vm2  ;;  %vm344_vm6 = vweird.f32 %v327_v24 }
  0xb0   : > { %v330_v26 = vmul.f32 %v667_v23, %v329_v25 }
  0xb2   : > { %v331_v27 = vmul.f32 0.5, %v330_v26 }
  0xb4   : > { %v332_v28 = vsub.f32 1.5, %v331_v27 }
  0xb5   : > { %v669_v29 = vpop.eup %668 }
  0xb6   : > { %v333_v30 = vmul.f32 %v667_v23, %v332_v28  ;;  %v339_v31 = vmul.f32 %v669_v29, %v327_v24  ;;  %vm345_vm5 = vweird.f32 %v669_v29 }
  0xb7   : > { %vm346_vm7 = vmor %vm344_vm6, %vm345_vm5 }
  0xb8   : > { %v337_v33 = vsel %vm336_vm4, %v667_v23, %v333_v30  ;;  %v340_v34 = vmul.f32 %v669_v29, %v339_v31 }
  0xb9   : > { %v348_v35 = vmul.f32 %v337_v33, %v306_v4 }
  0xba   : > { %v341_v36 = vmul.f32 0.5, %v340_v34 }
  0xbb   : > { %v354_v37 = vmul.f32 %v663_v32, %v348_v35 }
  0xbc   : > { %v342_v38 = vsub.f32 1.5, %v341_v36 }
  0xbd   : > { %356 = vst.msk [vmem:[#allocation3] sm:$0xff] %vm310_vm0, %v354_v37 }
  0xbe   : > { %v343_v39 = vmul.f32 %v669_v29, %v342_v38 }
  0xc0   : > { %v347_v40 = vsel %vm346_vm7, %v669_v29, %v343_v39 }
  0xc1   : > { %v349_v41 = vmul.f32 %v347_v40, %v307_v7 }
  0xc3   : > { %v355_v42 = vmul.f32 %v663_v32, %v349_v41 }
  0xc5   : > { %357 = vst.msk [vmem:[#allocation3 + $0x8] sm:$0xff] %vm310_vm0, %v355_v42 }
  0xc6 PF: > { %v365_v43 = vld [vmem:[%s834_s5 + $0x18] sm:$0xff]  ;;  %v364_v44 = vld [vmem:[%s834_s5 + $0x10] sm:$0xff]  ;;  %v363_v45 = vld [vmem:[%s834_s5 + $0x8] sm:$0xff]  ;;  %vm366_vm8 = vcmask 261120   ;;  %p586_p13 = scmp.ne.s32.totalorder %s712_s17, 1 }
  0xc7   : > { %385 = vmatpush.msra.mxu0 %v365_v43  ;;  %v431_v46 = vld [vmem:[%s832_s30 + $0x78] sm:$0xff]  ;;  %v430_v47 = vld [vmem:[%s832_s30 + $0x70] sm:$0xff]  ;;  %v362_v48 = vld [vmem:[%s834_s5] sm:$0xff] }
  0xc8   : > { %432 = vmatpush.msra.mxu1 %v431_v46  ;;  %v429_v49 = vld [vmem:[%s832_s30 + $0x68] sm:$0xff]  ;;  %589 = vmatpush.msra.mxu2 %v431_v46  ;;  %v360_v50 = vld [vmem:[#allocation3] sm:$0xff]  ;;  %v428_v51 = vld [vmem:[%s832_s30 + $0x60] sm:$0xff] }
  0xc9   : > { %386 = vmatpush.msra.mxu0 %v364_v44  ;;  %v427_v52 = vld [vmem:[%s832_s30 + $0x58] sm:$0xff]  ;;  %v426_v54 = vld [vmem:[%s832_s30 + $0x50] sm:$0xff]  ;;  %v425_v55 = vld [vmem:[%s832_s30 + $0x48] sm:$0xff] }
  0xca   : > { %433 = vmatpush.msra.mxu1 %v430_v47  ;;  %590 = vmatpush.msra.mxu2 %v430_v47  ;;  %v424_v56 = vld [vmem:[%s832_s30 + $0x40] sm:$0xff]  ;;  %v423_v57 = vld [vmem:[%s832_s30 + $0x38] sm:$0xff]  ;;  %v422_v58 = vld [vmem:[%s832_s30 + $0x30] sm:$0xff] }
  0xcb   : > { %387 = vmatpush.msra.mxu0 %v363_v45  ;;  %v421_v59 = vld [vmem:[%s832_s30 + $0x28] sm:$0xff]  ;;  %v420_v60 = vld [vmem:[%s832_s30 + $0x20] sm:$0xff]  ;;  %v419_v61 = vld [vmem:[%s832_s30 + $0x18] sm:$0xff] }
  0xcc   : > { %434 = vmatpush.msra.mxu1 %v429_v49  ;;  %591 = vmatpush.msra.mxu2 %v429_v49  ;;  %v361_v53 = vld [vmem:[#allocation3 + $0x8] sm:$0xff]  ;;  %v418_v62 = vld [vmem:[%s832_s30 + $0x10] sm:$0xff]  ;;  %v417_v63 = vld [vmem:[%s832_s30 + $0x8] sm:$0xff] }
  0xcd   : > { %388 = vmatpush.msra.mxu0 %v362_v48  ;;  %v416_v0 = vld [vmem:[%s832_s30] sm:$0xff]  ;;  %v415_v24 = vld [vmem:[#allocation2 + $0x8] sm:$0xff] }
  0xce   : > { %584 = vmatmul.msk.f32.vlgmr.msra.gmra.mxu0 %vm366_vm8, %v360_v50  ;;  %435 = vmatpush.msra.mxu1 %v428_v51  ;;  %v414_v21 = vld [vmem:[#allocation2] sm:$0xff] }
  0xcf   : > { %592 = vmatpush.msra.mxu2 %v428_v51 }
  0xd0   : > { %436 = vmatpush.msra.mxu1 %v427_v52 }
  0xd1   : > { %593 = vmatpush.msra.mxu2 %v427_v52 }
  0xd2   : > { %437 = vmatpush.msra.mxu1 %v426_v54 }
  0xd3   : > { %594 = vmatpush.msra.mxu2 %v426_v54 }
  0xd4   : > { %438 = vmatpush.msra.mxu1 %v425_v55 }
  0xd5   : > { %595 = vmatpush.msra.mxu2 %v425_v55 }
  0xd6   : > { %585 = vmatmul.msk.f32.gmra.mxu0 %vm366_vm8, %v361_v53  ;;  %439 = vmatpush.msra.mxu1 %v424_v56 }
  0xd7   : > { %596 = vmatpush.msra.mxu2 %v424_v56 }
  0xd8   : > { %440 = vmatpush.msra.mxu1 %v423_v57 }
  0xd9   : > { %597 = vmatpush.msra.mxu2 %v423_v57 }
  0xda   : > { %441 = vmatpush.msra.mxu1 %v422_v58 }
  0xdb   : > { %598 = vmatpush.msra.mxu2 %v422_v58 }
  0xdc   : > { %442 = vmatpush.msra.mxu1 %v421_v59 }
  0xdd   : > { %599 = vmatpush.msra.mxu2 %v421_v59 }
  0xde   : > { %443 = vmatpush.msra.mxu1 %v420_v60 }
  0xdf   : > { %600 = vmatpush.msra.mxu2 %v420_v60 }
  0xe0   : > { %444 = vmatpush.msra.mxu1 %v419_v61 }
  0xe1   : > { %601 = vmatpush.msra.mxu2 %v419_v61 }
  0xe2   : > { %445 = vmatpush.msra.mxu1 %v418_v62 }
  0xe3   : > { %602 = vmatpush.msra.mxu2 %v418_v62 }
  0xe4   : > { %446 = vmatpush.msra.mxu1 %v417_v63 }
  0xe5   : > { %603 = vmatpush.msra.mxu2 %v417_v63 }
  0xe6   : > { %447 = vmatpush.msra.mxu1 %v416_v0 }
  0xe7   : > { %604 = vmatpush.msra.mxu2 %v416_v0 }
 0x14b   : > { %v390_v1 = vpop.f32.mrf.mxu0 }
 0x14c   : > { %v398_v2 = vmul.f32 0.044715, %v390_v1  ;;  %v396_v14 = vmul.f32 0.5, %v390_v1 }
 0x14e   : > { %v400_v3 = vmul.f32 %v398_v2, %v390_v1 }
 0x150   : > { %v402_v4 = vmul.f32 %v400_v3, %v390_v1 }
 0x152   : > { %v404_v5 = vadd.f32 %v402_v4, %v390_v1 }
 0x153   : > { %v393_v6 = vpop.f32.mrf.mxu0 }
 0x154   : > { %v399_v7 = vmul.f32 0.044715, %v393_v6  ;;  %v406_v8 = vmul.f32 0.7978846, %v404_v5  ;;  %v397_v18 = vmul.f32 0.5, %v393_v6 }
 0x156   : > { %v401_v9 = vmul.f32 %v399_v7, %v393_v6  ;;  %670 = vtanh.f32 %v406_v8 }
 0x158   : > { %v403_v10 = vmul.f32 %v401_v9, %v393_v6 }
 0x15a   : > { %v405_v11 = vadd.f32 %v403_v10, %v393_v6 }
 0x15c   : > { %v671_v12 = vpop.eup %670  ;;  %v407_v13 = vmul.f32 0.7978846, %v405_v11 }
 0x15d   : > { %v410_v15 = vadd.f32 1.0, %v671_v12 }
 0x15e   : > { %672 = vtanh.f32 %v407_v13 }
 0x15f   : > { %v412_v16 = vmul.f32 %v410_v15, %v396_v14 }
 0x161   : > { %448 = vmatmul.f32.vlgmr.msra.gmra.mxu1 %v412_v16 }
 0x164   : > { %v673_v17 = vpop.eup %672 }
 0x165   : > { %v411_v19 = vadd.f32 1.0, %v673_v17 }
 0x167   : > { %v413_v20 = vmul.f32 %v411_v19, %v397_v18 }
 0x169   : > { %451 = vmatmul.f32.vlgmr.msra.gmra.mxu2 %v413_v20 }
 0x1de   : > { %v449_v22 = vpop.f32.mrf.mxu1 }
 0x1df   : > { %v455_v23 = vadd.f32 %v449_v22, %v414_v21 }
 0x1e1   : > { %457 = vst.msk [vmem:[#allocation2] sm:$0xff] %vm366_vm8, %v455_v23 }
 0x1eb   : > { %462 = sbr.rel (%p586_p13) target bundleno = 506 (0x1fa), region = 82 }
 0x1ec   : > { %v452_v25 = vpop.f32.mrf.mxu2 }
 0x1ed   : > { %v456_v26 = vadd.f32 %v452_v25, %v415_v24 }
 0x1ef   : > { %458 = vst.msk [vmem:[#allocation2 + $0x8] sm:$0xff] %vm366_vm8, %v456_v26 }
 0x1f0   : > { %v463_v27 = vld [vmem:[%s822_s24] sm:$0xff]  ;;  %v464_v29 = vld [vmem:[%s822_s24 + $0x8] sm:$0xff] }
 0x1f1   : > { %v465_v28 = vld [vmem:[#allocation2] sm:$0xff] }
 0x1f2   : > { %v467_v30 = vadd.f32 %v465_v28, %v463_v27 }
 0x1f4   : > { %469 = vst.msk [vmem:[%s827_s28] sm:$0xff] %vm366_vm8, %v467_v30 }
 0x1f6   : > { %v466_v31 = vld [vmem:[#allocation2 + $0x8] sm:$0xff] }
 0x1f7   : > { %v468_v32 = vadd.f32 %v466_v31, %v464_v29 }
 0x1f9   : > { %470 = vst.msk [vmem:[%s827_s28 + $0x8] sm:$0xff] %vm366_vm8, %v468_v32 }
 0x1fa PF: > { %s14_s21 = sadd.s32 1, %s728_s21   ;;  %s905_s15 = smov %s708_s16 }
 0x1fb   : > { %p11_p0 = scmp.ge.s32.totalorder %s14_s21, 10   ;;  %s906_s16 = smov %s806_s26 }
 0x1fc   : > { %s907_s17 = smov %s720_s19  ;;  %s908_s18 = smov %s724_s20 }
 0x1fd   : > { %s909_s19 = smov %s912_s22  ;;  %s910_s20 = smov %s916_s23 }
 0x1fe   :  { %13 = sbr.rel (!%p11_p0) target bundleno = 4 (0x4), region = 123 }

</bundles_post_ra>
